<compile_context>
chip_gen: v7x
topology: tpu7x:2x2x1
jax: 0.10.0
libtpu: 0.0.40
codegen_flags: <defaults>
</compile_context>

<pallas_src>
import math

import jax
import jax.numpy as jnp
from jax import lax
from jax.experimental import pallas as pl
from jax.experimental.pallas import tpu as pltpu

EPS_LN = 1e-6
EPS_SN = 1e-5


# ------------------------- kernels -------------------------

def _sublayer_layernorm_kernel(x_ref, a2_ref, b2_ref, w_ref, bias_ref, o_ref):
    """x + Linear(LayerNorm(x)); LayerNorm uses unbiased std and (std + eps)."""
    x = x_ref[...].astype(jnp.float32)                      # (TR, D)
    d = x.shape[-1]
    mean = jnp.mean(x, axis=-1, keepdims=True)              # (TR, 1)
    centered = x - mean
    # torch.std default is unbiased (divide by N-1)
    var_unbiased = jnp.sum(centered * centered, axis=-1, keepdims=True) / (d - 1)
    std = jnp.sqrt(var_unbiased)
    inv = pl.reciprocal(std + EPS_LN)                       # EUP, exact
    normed = a2_ref[...] * centered * inv + b2_ref[...]     # (TR, D)
    # sublayer = Linear(D, D); bf16 MXU operands, fp32 accumulation
    y = jnp.dot(normed.astype(jnp.bfloat16), w_ref[...],
                preferred_element_type=jnp.float32) + bias_ref[...]
    # dropout (eval mode) == identity; residual add in fp32
    o_ref[...] = (x + y).astype(o_ref.dtype)


def _sublayer_scalenorm_kernel(scale_ref, x_ref, w_ref, bias_ref, o_ref):
    """x + Linear(ScaleNorm(x)); ScaleNorm = x * scale / max(||x||_2, eps)."""
    x = x_ref[...].astype(jnp.float32)                      # (TR, D)
    sumsq = jnp.sum(x * x, axis=-1, keepdims=True)          # (TR, 1)
    # rsqrt on clamped sum-of-squares == scale / max(||x||, eps); no sqrt+div
    inv_nrm = lax.rsqrt(jnp.maximum(sumsq, EPS_SN * EPS_SN))
    normed = x * (scale_ref[0, 0] * inv_nrm)
    y = jnp.dot(normed.astype(jnp.bfloat16), w_ref[...],
                preferred_element_type=jnp.float32) + bias_ref[...]
    o_ref[...] = (x + y).astype(o_ref.dtype)


# ------------------------- helpers -------------------------

def _pick_tile_rows(n_rows, *, max_tile=2048, target_steps=8):
    """Large tiles amortize per-step overhead; keep ~target_steps grid steps so
    the pipeline overlaps and v7x megacore can shard the row axis."""
    t = max(8, min(max_tile, pl.cdiv(n_rows, target_steps)))
    return ((t + 7) // 8) * 8            # sublane multiple


def _vmem_limit_bytes(tile_rows, d, out_itemsize):
    tile_in = tile_rows * d * 4          # fp32 row tile
    tile_out = tile_rows * d * out_itemsize
    # in/out row tiles double-buffered, W (bf16) single-buffered, param vectors, slack
    need = 2 * tile_in + 2 * tile_out + d * d * 2 + 8 * d * 4 + (8 << 20)
    try:
        cap = pltpu.get_tpu_info().vmem_capacity_bytes - (8 << 20)
    except Exception:
        cap = 56 << 20                   # conservative: v7x has 64 MiB per TC
    return int(max(min(need, cap), min(32 << 20, cap)))


# ------------------------- wrappers -------------------------

def sublayer_connection_layernorm(x, a2, b2, w, bias, *, tile_rows=None):
    """x: (B, S, D); a2, b2, bias: (D,); w: (D, D)."""
    B, S, D = x.shape
    R = B * S
    if tile_rows is None:
        tile_rows = _pick_tile_rows(R)
    xf = x.reshape(R, D)                 # no padding; Pallas masks partial blocks
    w_bf16 = w.astype(jnp.bfloat16)
    invariant = pl.Buffered(1)           # grid-invariant operand: single buffer
    out = pl.pallas_call(
        _sublayer_layernorm_kernel,
        out_shape=jax.ShapeDtypeStruct((R, D), x.dtype),
        grid_spec=pltpu.PrefetchScalarGridSpec(
            num_scalar_prefetch=0,
            grid=(pl.cdiv(R, tile_rows),),
            in_specs=[
                pl.BlockSpec((tile_rows, D), lambda i: (i, 0)),   # x rows
                pl.BlockSpec((1, D), lambda i: (0, 0)),           # a_2
                pl.BlockSpec((1, D), lambda i: (0, 0)),           # b_2
                pl.BlockSpec((D, D), lambda i: (0, 0),
                             pipeline_mode=invariant),            # W (bf16)
                pl.BlockSpec((1, D), lambda i: (0, 0)),           # bias
            ],
            out_specs=pl.BlockSpec((tile_rows, D), lambda i: (i, 0)),
        ),
        compiler_params=pltpu.CompilerParams(
            dimension_semantics=("parallel",),
            vmem_limit_bytes=_vmem_limit_bytes(tile_rows, D, x.dtype.itemsize)),
    )(xf, a2.reshape(1, D), b2.reshape(1, D), w_bf16, bias.reshape(1, D))
    return out.reshape(B, S, D)


def sublayer_connection_scalenorm(x, scale, w, bias, *, tile_rows=None):
    """x: (B, S, D); scale: scalar; bias: (D,); w: (D, D)."""
    B, S, D = x.shape
    R = B * S
    if tile_rows is None:
        tile_rows = _pick_tile_rows(R)
    xf = x.reshape(R, D)
    w_bf16 = w.astype(jnp.bfloat16)
    invariant = pl.Buffered(1)
    out = pl.pallas_call(
        _sublayer_scalenorm_kernel,
        out_shape=jax.ShapeDtypeStruct((R, D), x.dtype),
        grid_spec=pltpu.PrefetchScalarGridSpec(
            num_scalar_prefetch=0,
            grid=(pl.cdiv(R, tile_rows),),
            in_specs=[
                pl.BlockSpec(memory_space=pltpu.MemorySpace.SMEM),  # scale (1,1)
                pl.BlockSpec((tile_rows, D), lambda i: (i, 0)),     # x rows
                pl.BlockSpec((D, D), lambda i: (0, 0),
                             pipeline_mode=invariant),              # W (bf16)
                pl.BlockSpec((1, D), lambda i: (0, 0)),             # bias
            ],
            out_specs=pl.BlockSpec((tile_rows, D), lambda i: (i, 0)),
        ),
        compiler_params=pltpu.CompilerParams(
            dimension_semantics=("parallel",),
            vmem_limit_bytes=_vmem_limit_bytes(tile_rows, D, x.dtype.itemsize)),
    )(scale.reshape(1, 1).astype(jnp.float32), xf, w_bf16, bias.reshape(1, D))
    return out.reshape(B, S, D)


# ------------------------- pure-JAX references -------------------------

def _ref_layernorm(x, a2, b2, w, bias):
    xf = x.astype(jnp.float32)
    mean = xf.mean(-1, keepdims=True)
    std = jnp.sqrt(((xf - mean) ** 2).sum(-1, keepdims=True) / (xf.shape[-1] - 1))
    normed = a2 * (xf - mean) / (std + EPS_LN) + b2
    y = normed @ w + bias
    return (xf + y).astype(x.dtype)


def _ref_scalenorm(x, scale, w, bias):
    xf = x.astype(jnp.float32)
    nrm = jnp.clip(jnp.sqrt((xf ** 2).sum(-1, keepdims=True)), EPS_SN, None)
    normed = xf * (scale / nrm)
    y = normed @ w + bias
    return (xf + y).astype(x.dtype)


# ------------------------- main -------------------------

if __name__ == "__main__":
    B, S, D = 2, 8, 128   # batch, seq, hidden ("size" == D)
    key = jax.random.PRNGKey(0)
    kx, kw, kb = jax.random.split(key, 3)

    x = jax.random.normal(kx, (B, S, D), dtype=jnp.float32)

    # LayerNorm params (as in __init__: ones / zeros)
    a2 = jnp.ones((D,), jnp.float32)
    b2 = jnp.zeros((D,), jnp.float32)
    # ScaleNorm param (initialized to sqrt(size))
    scale = jnp.asarray(math.sqrt(D), jnp.float32)
    # Deterministic sublayer Linear(D, D) params
    w = jax.random.normal(kw, (D, D), dtype=jnp.float32) / math.sqrt(D)
    bias = jax.random.normal(kb, (D,), dtype=jnp.float32) * 0.01

    # bf16 MXU operands => looser tolerance vs fp32 reference
    ATOL, RTOL = 5e-2, 5e-2

    # LayerNorm variant (scale_norm=False)
    out_ln = jax.block_until_ready(sublayer_connection_layernorm(x, a2, b2, w, bias))
    ref_ln = _ref_layernorm(x, a2, b2, w, bias)
    assert jnp.allclose(out_ln, ref_ln, atol=ATOL, rtol=RTOL), "LayerNorm variant mismatch"

    # ScaleNorm variant (scale_norm=True)
    out_sn = jax.block_until_ready(sublayer_connection_scalenorm(x, scale, w, bias))
    ref_sn = _ref_scalenorm(x, scale, w, bias)
    assert jnp.allclose(out_sn, ref_sn, atol=ATOL, rtol=RTOL), "ScaleNorm variant mismatch"

    print("KERNEL_OK")
</pallas_src>

<mosaic_0001>
module attributes {stable_mosaic.version = 11 : i64} {
  func.func @_sublayer_layernorm_kernel(%arg0: i32, %arg1: memref<8x128xf32, #tpu.memory_space<vmem>>, %arg2: memref<1x128xf32, #tpu.memory_space<vmem>>, %arg3: memref<1x128xf32, #tpu.memory_space<vmem>>, %arg4: memref<128x128xbf16, #tpu.memory_space<vmem>>, %arg5: memref<1x128xf32, #tpu.memory_space<vmem>>, %arg6: memref<8x128xf32, #tpu.memory_space<vmem>>) attributes {dimension_semantics = [#tpu.dimension_semantics<parallel>], iteration_bounds = array<i64: 2>, scalar_prefetch = 0 : i64, scratch_operands = 0 : i64, tpu.core_type = #tpu.core_type<tc>, window_params = [{transform_indices = @transform_0, window_bounds = array<i64: 8, 128>}, {pipeline_mode = #tpu.pipeline_mode<synchronous>, transform_indices = @transform_1, window_bounds = array<i64: 1, 128>}, {pipeline_mode = #tpu.pipeline_mode<synchronous>, transform_indices = @transform_2, window_bounds = array<i64: 1, 128>}, {pipeline_mode = #tpu.pipeline_mode<synchronous>, transform_indices = @transform_3, window_bounds = array<i64: 128, 128>}, {pipeline_mode = #tpu.pipeline_mode<synchronous>, transform_indices = @transform_4, window_bounds = array<i64: 1, 128>}, {transform_indices = @transform_5, window_bounds = array<i64: 8, 128>}]} {
    %c0 = arith.constant 0 : index
    %c0_0 = arith.constant 0 : index
    %0 = vector.load %arg1[%c0, %c0_0] : memref<8x128xf32, #tpu.memory_space<vmem>>, vector<8x128xf32>
    %cst = arith.constant dense<0.000000e+00> : vector<8xf32>
    %1 = vector.multi_reduction <add>, %0, %cst [1] : vector<8x128xf32> to vector<8xf32>
    %2 = vector.shape_cast %1 : vector<8xf32> to vector<8x1xf32>
    %cst_1 = arith.constant 1.280000e+02 : f32
    %3 = vector.broadcast %cst_1 : f32 to vector<8x1xf32>
    %4 = arith.divf %2, %3 : vector<8x1xf32>
    %5 = vector.broadcast %4 : vector<8x1xf32> to vector<8x128xf32>
    %6 = arith.subf %0, %5 : vector<8x128xf32>
    %7 = arith.mulf %6, %6 : vector<8x128xf32>
    %cst_2 = arith.constant dense<0.000000e+00> : vector<8xf32>
    %8 = vector.multi_reduction <add>, %7, %cst_2 [1] : vector<8x128xf32> to vector<8xf32>
    %9 = vector.shape_cast %8 : vector<8xf32> to vector<8x1xf32>
    %cst_3 = arith.constant 1.270000e+02 : f32
    %10 = vector.broadcast %cst_3 : f32 to vector<8x1xf32>
    %11 = arith.divf %9, %10 : vector<8x1xf32>
    %12 = math.sqrt %11 : vector<8x1xf32>
    %cst_4 = arith.constant 9.99999997E-7 : f32
    %13 = vector.broadcast %cst_4 : f32 to vector<8x1xf32>
    %14 = arith.addf %12, %13 : vector<8x1xf32>
    %15 = tpu.reciprocal %14 : vector<8x1xf32> -> vector<8x1xf32>
    %c0_5 = arith.constant 0 : index
    %c0_6 = arith.constant 0 : index
    %16 = vector.load %arg2[%c0_5, %c0_6] : memref<1x128xf32, #tpu.memory_space<vmem>>, vector<1x128xf32>
    %17 = vector.broadcast %16 : vector<1x128xf32> to vector<8x128xf32>
    %18 = arith.mulf %17, %6 : vector<8x128xf32>
    %19 = vector.broadcast %15 : vector<8x1xf32> to vector<8x128xf32>
    %20 = arith.mulf %18, %19 : vector<8x128xf32>
    %c0_7 = arith.constant 0 : index
    %c0_8 = arith.constant 0 : index
    %21 = vector.load %arg3[%c0_7, %c0_8] : memref<1x128xf32, #tpu.memory_space<vmem>>, vector<1x128xf32>
    %22 = vector.broadcast %21 : vector<1x128xf32> to vector<8x128xf32>
    %23 = arith.addf %20, %22 : vector<8x128xf32>
    %24 = arith.truncf %23 : vector<8x128xf32> to vector<8x128xbf16>
    %c0_9 = arith.constant 0 : index
    %c0_10 = arith.constant 0 : index
    %25 = vector.load %arg4[%c0_9, %c0_10] : memref<128x128xbf16, #tpu.memory_space<vmem>>, vector<128x128xbf16>
    %cst_11 = arith.constant dense<0.000000e+00> : vector<8x128xf32>
    %26 = tpu.matmul %24, %25, %cst_11 {dimension_numbers = #tpu.dot_dimension_numbers<[1], [0], [0], [1], [0, 0, 1, 1], [], []>} : vector<8x128xbf16>, vector<128x128xbf16>, vector<8x128xf32> -> vector<8x128xf32>
    %c0_12 = arith.constant 0 : index
    %c0_13 = arith.constant 0 : index
    %27 = vector.load %arg5[%c0_12, %c0_13] : memref<1x128xf32, #tpu.memory_space<vmem>>, vector<1x128xf32>
    %28 = vector.broadcast %27 : vector<1x128xf32> to vector<8x128xf32>
    %29 = arith.addf %26, %28 : vector<8x128xf32>
    %30 = arith.addf %0, %29 : vector<8x128xf32>
    %c0_14 = arith.constant 0 : index
    %c0_15 = arith.constant 0 : index
    %31 = vector.load %arg6[%c0_14, %c0_15] : memref<8x128xf32, #tpu.memory_space<vmem>>, vector<8x128xf32>
    tpu.vector_store %arg6[%c0_14, %c0_15], %30 {strides = array<i32>} : memref<8x128xf32, #tpu.memory_space<vmem>>, vector<8x128xf32>,
    return
  }
  func.func @transform_0(%arg0: i32) -> (i32, i32) {
    %c0_i32 = arith.constant 0 : i32
    %c0_i32_0 = arith.constant 0 : i32
    return %arg0, %c0_i32 : i32, i32
  }
  func.func @transform_1(%arg0: i32) -> (i32, i32) {
    %c0_i32 = arith.constant 0 : i32
    %c0_i32_0 = arith.constant 0 : i32
    %c0_i32_1 = arith.constant 0 : i32
    return %c0_i32, %c0_i32_0 : i32, i32
  }
  func.func @transform_2(%arg0: i32) -> (i32, i32) {
    %c0_i32 = arith.constant 0 : i32
    %c0_i32_0 = arith.constant 0 : i32
    %c0_i32_1 = arith.constant 0 : i32
    return %c0_i32, %c0_i32_0 : i32, i32
  }
  func.func @transform_3(%arg0: i32) -> (i32, i32) {
    %c0_i32 = arith.constant 0 : i32
    %c0_i32_0 = arith.constant 0 : i32
    %c0_i32_1 = arith.constant 0 : i32
    return %c0_i32, %c0_i32_0 : i32, i32
  }
  func.func @transform_4(%arg0: i32) -> (i32, i32) {
    %c0_i32 = arith.constant 0 : i32
    %c0_i32_0 = arith.constant 0 : i32
    %c0_i32_1 = arith.constant 0 : i32
    return %c0_i32, %c0_i32_0 : i32, i32
  }
  func.func @transform_5(%arg0: i32) -> (i32, i32) {
    %c0_i32 = arith.constant 0 : i32
    %c0_i32_0 = arith.constant 0 : i32
    return %arg0, %c0_i32 : i32, i32
  }
}

</mosaic_0001>

<bundles_post_ra>
// kernel: tpu_custom_call.1
= control target key start
LH: loop header
LB: loop body
LE: loop exit
PB: predicated region body
PF: predicated region fallthrough
CT: control target
= control target key end

     0   :  { %10 = vsyncpa [#allocation3], 0  ;;  %s1004_s0 = inlined_call_operand.hbm [shape: f32[16,128], index: 0, kind: input, shape index: {}]   ;;  %s1005_s1 = inlined_call_operand.vmem [shape: f32[1,128], index: 1, kind: input, shape index: {}]   ;;  %s1006_s2 = inlined_call_operand.vmem [shape: f32[1,128], index: 2, kind: input, shape index: {}]   ;;  %s1007_s3 = inlined_call_operand.hbm [shape: bf16[128,128], index: 3, kind: input, shape index: {}]   ;;  %s1008_s4 = inlined_call_operand.vmem [shape: f32[1,128], index: 4, kind: input, shape index: {}]   ;;  %s1009_s5 = inlined_call_operand.hbm [shape: f32[16,128], index: 5, kind: output, shape index: {}]  }
   0x1   :  { %12 = vsyncpa [#allocation3 + $0x1], 0 }
   0x2   :  { %13 = vsyncpa [#allocation6], 0 }
   0x3   :  { %14 = vsyncpa [#allocation4], 0 }
   0x4   :  { %16 = vsyncpa [#allocation4 + $0x1], 0  ;;  %s795_s18 = smov 0   ;;  %s797_s19 = smov 0  }
   0x5   :  { %s799_s20 = smov 0   ;;  %s801_s21 = smov 0  }
   0x6 LB: > { %s816_s22 = sadd.s32 4294967295, %s756_s21   ;;  %s501_s23 = sadd.s32 4294967294, %s756_s21   ;;  %s756_s21 = sphi %s801_s21, %s1029_s21   ;;  %s752_s20 = sphi %s799_s20, %s1028_s20   ;;  %s748_s19 = sphi %s797_s19, %s1027_s19   ;;  %s744_s18 = sphi %s795_s18, %s1026_s18  }
   0x7   : > { %p42_p0 = scmp.ne.s32.totalorder %s748_s19, %s744_s18  ;;  %p1010_p1 = scmp.eq.s32.totalorder %s816_s22, 0 }
   0x8   : > { %p156_p3 = scmp.eq.s32.totalorder %s501_s23, 1  ;;  %p502_p5 = scmp.ge.s32.totalorder %s756_s21, 1 }
   0x9   : > { %p825_p4 = por %p1010_p1, %p42_p0  ;;  %p163_p7 = scmp.lt.s32.totalorder %s756_s21, 3 }
   0xa   : > { %p830_p6 = por %p156_p3, %p42_p0  ;;  %s758_s27 = smov [#allocation5]  }
   0xb   : > { %s1013_s24 = scalar_select %p825_p4, 1, 0 }
   0xc   : > { %s1014_s25 = scalar_select %p830_p6, 1, 0 }
   0xd   : > { %p835_p8 = pnand %p502_p5, %p163_p7  ;;  %s181_s28 = sshll.u32 %s758_s27, 4  ;;  %s839_s28 = int_to_ptr.vmem [resolvable:$true] %s181_s28 }
   0xe   : > { %s851_s30 = sadd.s32 1, %s756_s21   ;;  %s29_s6 = sadd.s32 1, %s752_s20 }
   0xf   : > { %s1015_s26 = scalar_select %p835_p8, 1, 0 }
  0x10   : > { %p563_p9 = pneg %p835_p8  ;;  %s26_s7 = ssub.s32 %s756_s21, %s851_s30 }
  0x11   : > { %s628_s10 = scalar_lea.hbm %s1007_s3, 1024 }
  0x12   : > { %p846_p11 = pnand %p563_p9, %p1010_p1  ;;  %p629_p12 = scmp.ne.s32.totalorder %s1007_s3, %s628_s10 }
  0x13   : > { %p635_p5 = scmp.lt.u32.totalorder %s628_s10, %s1007_s3 }
  0x14   : > { %p630_p13 = pneg %p846_p11 }
  0x16   : > { %p631_p0 = pnand %p630_p13, %p629_p12 }
  0x18   : > { %p632_p3 = pneg %p631_p0 }
  0x1a   : > { %p637_p7 = pnand %p635_p5, %p632_p3 }
  0x1c   : > { %640 = shalt.err (!%p637_p7)
}
  0x1d   : > { %s641_s15 = scalar_lea.vmem %s839_s28, 1024  ;;  %p649_p2 = scmp.lt.s32.totalorder %s839_s28, %s839_s28 }
  0x1e   : > { %p642_p9 = scmp.ne.s32.totalorder %s839_s28, %s641_s15  ;;  %p650_p6 = scmp.lt.s32.totalorder %s641_s15, %s641_s15 }
  0x20   : > { %p644_p10 = pnand %p642_p9, %p630_p13  ;;  %p651_p4 = por %p650_p6, %p649_p2 }
  0x22   : > { %p645_p1 = pneg %p644_p10 }
  0x24   : > { %p652_p8 = pnand %p651_p4, %p645_p1 }
  0x26   : > { %655 = shalt.err (!%p652_p8)
}
  0x27   : > { %s759_s16 = smov 64   ;;  %s760_s17 = smov 4  }
  0x28   : > { %566 = dma.hbm_to_vmem [thread:$0]  (!%p846_p11), %s1007_s3, 1024, %s839_s28, [#allocation6], %s759_s16, %s759_s16, %s760_s17  }
  0x29   : > { %p27_p2 = scmp.eq.s32.totalorder %s26_s7, 0  ;;  %p36_p1 = scmp.ne.s32.totalorder %s752_s20, %s748_s19 }
  0x2a   : > { %p37_p4 = scmp.eq.s32.totalorder %s756_s21, 0  ;;  %p576_p6 = scmp.lt.s32.totalorder %s756_s21, 2 }
  0x2b   : > { %s882_s8 = scalar_select %p27_p2, %s752_s20, %s29_s6  }
  0x2c   : > { %p38_p8 = por %p37_p4, %p36_p1  ;;  %p1017_p10 = scmp.eq.s32.totalorder %s816_s22, 1 }
  0x2d   : > { %s198_s10 = sand.u32 1, %s752_s20   ;;  %s506_s11 = sshll.u32 %s756_s21, 7 }
  0x2e   : > { %p886_p12 = por %p1017_p10, %p36_p1  ;;  %s505_s12 = sshll.u32 %s198_s10, 3 }
  0x2f   : > { %s895_s14 = scalar_lea.hbm %s1004_s0, %s506_s11  ;;  %s202_s28 = scalar_lea.vmem [#allocation2], %s505_s12 }
  0x30   : > { %s209_s6 = sshll.u32 %s202_s28, 4  ;;  %p897_p11 = pnand %p576_p6, %p38_p8  ;;  %s901_s6 = int_to_ptr.vmem [resolvable:$true] %s209_s6 }
  0x31   : > { %s199_s15 = scalar_lea.sflag [#allocation3], %s198_s10  ;;  %s656_s16 = scalar_lea.hbm %s895_s14, 128 }
  0x32   : > { %p657_p13 = scmp.ne.s32.totalorder %s895_s14, %s656_s16  ;;  %p658_p0 = pneg %p897_p11 }
  0x33   : > { %s661_s27 = scalar_lea.hbm %s1004_s0, 256  ;;  %p662_p7 = scmp.lt.u32.totalorder %s895_s14, %s1004_s0 }
  0x34   : > { %p659_p3 = pnand %p658_p0, %p657_p13  ;;  %p663_p9 = scmp.lt.u32.totalorder %s661_s27, %s656_s16 }
  0x35   : > { %p665_p1 = scmp.lt.u32.totalorder %s656_s16, %s895_s14 }
  0x36   : > { %p660_p5 = pneg %p659_p3  ;;  %p664_p2 = por %p663_p9, %p662_p7 }
  0x38   : > { %p666_p4 = por %p665_p1, %p664_p2 }
  0x3a   : > { %p667_p6 = pnand %p666_p4, %p660_p5 }
  0x3c   : > { %670 = shalt.err (!%p667_p6)
}
  0x3d   : > { %s671_s10 = scalar_lea.vmem %s901_s6, 128  ;;  %s761_s29 = smov [#allocation2]  }
  0x3e   : > { %p672_p8 = scmp.ne.s32.totalorder %s901_s6, %s671_s10  ;;  %s676_s13 = sshll.u32 %s761_s29, 4  ;;  %s677_s13 = int_to_ptr.vmem [resolvable:$false] %s676_s13 }
  0x3f   : > { %s678_s28 = scalar_lea.vmem %s677_s13, 256  ;;  %p679_p3 = scmp.lt.s32.totalorder %s901_s6, %s677_s13 }
  0x40   : > { %p674_p10 = pnand %p672_p8, %p658_p0  ;;  %p680_p7 = scmp.lt.s32.totalorder %s678_s28, %s671_s10 }
  0x42   : > { %p675_p13 = pneg %p674_p10  ;;  %p681_p9 = por %p680_p7, %p679_p3 }
  0x44   : > { %p682_p2 = pnand %p681_p9, %p675_p13 }
  0x46   : > { %685 = shalt.err (!%p682_p2)
}
  0x47   : > { %570 = dma.hbm_to_vmem [thread:$0]  (!%p897_p11), %s895_s14, 128, %s901_s6, %s199_s15  }
  0x48   : > { %p1020_p5 = scmp.ne.s32.totalorder %s1015_s26, 0 }
  0x49   : > { %s931_s16 = sand.u32 (!%p1020_p5), 1, %s748_s19   ;;  %p1021_p0 = scmp.ne.s32.totalorder (!%p1020_p5), %s1013_s24, 0 }
  0x4a   : > { %218 = sbr.rel (%p1020_p5) target bundleno = 642 (0x282), region = 40  ;;  %s508_s17 = sshll.u32 (!%p1020_p5), %s931_s16, 3 }
  0x4b   : > { %s221_s23 = scalar_lea.sflag (!%p1020_p5), [#allocation3], %s931_s16  ;;  %s224_s27 = scalar_lea.vmem (!%p1020_p5), [#allocation2], %s508_s17 }
  0x51   : > { %731 = dma.done.wait (%p1021_p0), %s221_s23, 128  }
  0x52   : > { %733 = vsyncadd (%p1021_p0), %s221_s23, 4294967168  ;;  %p1022_p11 = scmp.eq.s32.totalorder %s816_s22, 0 }
  0x54   : > { %735 = dma.done.wait (%p1022_p11), [#allocation6], 1024   ;;  %p1023_p1 = pmov %p1022_p11 }
  0x55   : > { %v256_v0 = vld [vmem:[%s224_s27] sm:$0xff]  ;;  %v616_v5 = vld [vmem:[#allocation5] sm:$0xff]   ;;  %v762_v6 = vmov 0.0   ;;  %v617_v7 = vld [vmem:[#allocation5 + $0x8] sm:$0xff]   ;;  %vm763_vm0 = vmmov 0   ;;  %s523_s11 = sshll.u32 %s816_s22, 7 }
  0x56   : > { %737 = vsyncadd (%p1023_p1), [#allocation6], 4294966272  ;;  %257 = vadd.xlane.f32.xlu0 %v256_v0  ;;  %535 = vmatprep.subr.bf16.mxu0 %v762_v6  ;;  %v618_v8 = vld [vmem:[#allocation5 + $0x10] sm:$0xff]   ;;  %v619_v9 = vld [vmem:[#allocation5 + $0x18] sm:$0xff]   ;;  %s254_s12 = scalar_lea.vmem [#allocation7], %s508_s17  ;;  %s960_s28 = scalar_lea.hbm %s1009_s5, %s523_s11 }
  0x57   : > { %536 = vmatpush3.bf16.msra.mxu0 %v616_v5  ;;  %551 = vmatprep.mubr.msk.bf16.mxu0 %vm763_vm0, %v762_v6  ;;  %v620_v10 = vld [vmem:[#allocation5 + $0x20] sm:$0xff]   ;;  %v621_v11 = vld [vmem:[#allocation5 + $0x28] sm:$0xff]   ;;  %v622_v12 = vld [vmem:[#allocation5 + $0x30] sm:$0xff]   ;;  %s421_s10 = sshll.u32 %s254_s12, 4  ;;  %s408_s22 = scalar_lea.sflag [#allocation4], %s931_s16  ;;  %s962_s10 = int_to_ptr.vmem [resolvable:$true] %s421_s10 }
  0x58   : > { %537 = vmatprep.subr.bf16.mxu0 %v762_v6  ;;  %v623_v13 = vld [vmem:[#allocation5 + $0x38] sm:$0xff]   ;;  %v511_v22 = vld [vmem:[%s1005_s1] ss:$0 sm:$0xff]  ;;  %s686_s23 = scalar_lea.vmem %s962_s10, 128  ;;  %s764_s17 = smov [#allocation7]  }
  0x59   : > { %v512_v25 = vld [vmem:[%s1006_s2] ss:$0 sm:$0xff]  ;;  %p687_p4 = scmp.ne.s32.totalorder %s962_s10, %s686_s23  ;;  %s690_s27 = sshll.u32 %s764_s17, 4  ;;  %s691_s27 = int_to_ptr.vmem [resolvable:$false] %s690_s27 }
  0x5a   : > { %v513_v29 = vld [vmem:[%s1008_s4] ss:$0 sm:$0xff]  ;;  %s692_s24 = scalar_lea.vmem %s691_s27, 256  ;;  %p693_p10 = scmp.lt.s32.totalorder %s962_s10, %s691_s27 }
  0x5b   : > { %538 = vmatpush3.bf16.msra.mxu0 %v617_v7  ;;  %p688_p6 = pnand %p687_p4, %p886_p12  ;;  %p694_p13 = scmp.lt.s32.totalorder %s692_s24, %s686_s23 }
  0x5c   : > { %539 = vmatprep.subr.bf16.mxu0 %v762_v6 }
  0x5d   : > { %p689_p8 = pneg %p688_p6  ;;  %p695_p3 = por %p694_p13, %p693_p10 }
  0x5f   : > { %540 = vmatpush3.bf16.msra.mxu0 %v618_v8  ;;  %p696_p7 = pnand %p695_p3, %p689_p8 }
  0x60   : > { %541 = vmatprep.subr.bf16.mxu0 %v762_v6 }
  0x63   : > { %542 = vmatpush3.bf16.msra.mxu0 %v619_v9 }
  0x64   : > { %543 = vmatprep.subr.bf16.mxu0 %v762_v6 }
  0x67   : > { %544 = vmatpush3.bf16.msra.mxu0 %v620_v10 }
  0x68   : > { %545 = vmatprep.subr.bf16.mxu0 %v762_v6 }
  0x6b   : > { %546 = vmatpush3.bf16.msra.mxu0 %v621_v11 }
  0x6c   : > { %547 = vmatprep.subr.bf16.mxu0 %v762_v6 }
  0x6f   : > { %548 = vmatpush3.bf16.msra.mxu0 %v622_v12 }
  0x70   : > { %549 = vmatprep.subr.bf16.mxu0 %v762_v6 }
  0x73   : > { %550 = vmatpush3.bf16.msra.mxu0 %v623_v13 }
  0xe3   : > { %v258_v1 = vpop.xlane.xlu0 %257 }
  0xe4   : > { %v260_v2 = vmul.f32 0.0078125, %v258_v1 }
  0xe6   : > { %v261_v3 = vsub.f32 %v256_v0, %v260_v2 }
  0xe8   : > { %v262_v4 = vmul.f32 %v261_v3, %v261_v3  ;;  %v283_v23 = vmul.f32 %v511_v22, %v261_v3 }
  0xea   : > { %263 = vadd.xlane.f32.xlu0 %v262_v4 }
 0x177   : > { %v264_v14 = vpop.xlane.xlu0 %263 }
 0x178   : > { %v266_v15 = vmul.f32 0.007874016, %v264_v14 }
 0x17a   : > { %624 = vrsqrt.f32 %v266_v15  ;;  %vm269_vm1 = vcmp.eq.f32.partialorder %v266_v15, inf  ;;  %v272_v18 = vand.u32 2147483648, %v266_v15  ;;  %vm271_vm2 = vcmp.eq.f32.partialorder %v266_v15, 0.0 }
 0x184   : > { %v625_v16 = vpop.eup %624 }
 0x185   : > { %v268_v17 = vmul.f32 %v625_v16, %v266_v15 }
 0x187   : > { %v270_v19 = vsel %vm269_vm1, %v266_v15, %v268_v17 }
 0x188   : > { %v273_v20 = vsel %vm271_vm2, %v272_v18, %v270_v19 }
 0x189   : > { %v274_v21 = vadd.f32 1e-06, %v273_v20 }
 0x18b   : > { %626 = vrcp.f32 %v274_v21 }
 0x195   : > { %v627_v24 = vpop.eup %626 }
 0x196   : > { %v284_v26 = vmul.f32 %v627_v24, %v283_v23 }
 0x198   : > { %v292_v27 = vadd.f32 %v512_v25, %v284_v26 }
 0x19a   : > { %v293_v28 = vpack.c.bf16 %v292_v27, %v292_v27 }
 0x19c   : > { %552 = vmatmul.mubr.bf16.vlgmr.msra.gmra.mrb[0].mxu0 %v293_v28 }
 0x26f   : > { %v399_v30 = vpop.f32.mrb[0].mxu0 }
 0x270   : > { %v400_v31 = vadd.f32 %v513_v29, %v399_v30  ;;  %v553_v32 = vpop.f32.mrb[1].mxu0 }
 0x271   : > { %v402_v33 = vpop.f32.mrb[2].mxu0 }
 0x272   : > { %v405_v34 = vadd.f32 %v400_v31, %v256_v0  ;;  %v554_v35 = vpop.f32.mrb[3].mxu0 }
 0x274   : > { %406 = vst [vmem:[%s254_s12] sm:$0xff] %v405_v34 }
 0x275   : > { %699 = shalt.err (!%p696_p7)
}
 0x276   : > { %s700_s16 = scalar_lea.hbm %s960_s28, 128  ;;  %s704_s6 = scalar_lea.hbm %s1009_s5, 256 }
 0x277   : > { %p701_p9 = scmp.ne.s32.totalorder %s960_s28, %s700_s16  ;;  %p705_p0 = scmp.lt.u32.totalorder %s960_s28, %s1009_s5 }
 0x278   : > { %p706_p11 = scmp.lt.u32.totalorder %s704_s6, %s700_s16  ;;  %p708_p4 = scmp.lt.u32.totalorder %s700_s16, %s960_s28 }
 0x279   : > { %p702_p2 = pnand %p701_p9, %p886_p12 }
 0x27a   : > { %p707_p1 = por %p706_p11, %p705_p0 }
 0x27b   : > { %p703_p5 = pneg %p702_p2 }
 0x27c   : > { %p709_p6 = por %p708_p4, %p707_p1 }
 0x27e   : > { %p710_p8 = pnand %p709_p6, %p703_p5 }
 0x280   : > { %713 = shalt.err (!%p710_p8)
}
 0x281   : > { %561 = dma.vmem_to_hbm [thread:$0]  (%p886_p12), %s962_s10, 128, %s960_s28, %s408_s22  }
 0x282 PF: > { %s433_s11 = sand.u32 1, %s744_s18   ;;  %p1024_p10 = scmp.ne.s32.totalorder %s1014_s25, 0 }
 0x283   : > { %p1025_p13 = scmp.ge.s32.totalorder %s756_s21, 2  ;;  %s434_s12 = scalar_lea.sflag [#allocation4], %s433_s11 }
 0x285   : > { %p572_p3 = pnand %p1025_p13, %p1024_p10 }
 0x287   : > { %739 = dma.done.wait (!%p572_p3), %s434_s12, 128  }
 0x288   : > { %741 = vsyncadd (!%p572_p3), %s434_s12, 4294967168  ;;  %p19_p7 = scmp.ge.s32.totalorder %s851_s30, 4   ;;  %s1026_s18 = smov %s748_s19 }
 0x289   : > { %s1027_s19 = smov %s752_s20  ;;  %s1028_s20 = smov %s882_s8 }
 0x28a   : > { %s1029_s21 = smov %s851_s30  ;;  %21 = sbr.rel (!%p19_p7) target bundleno = 6 (0x6), region = 89 }
 0x291   :  { %439 = vsyncpa [#allocation3], 1 }
 0x292   :  { %441 = vsyncpa [#allocation3 + $0x1], 1 }
 0x293   :  { %442 = vsyncpa [#allocation6], 1 }
 0x294   :  { %443 = vsyncpa [#allocation4], 1 }
 0x295   :  { %445 = vsyncpa [#allocation4 + $0x1], 1 }

</bundles_post_ra>
